<compile_context>
chip_gen: v6e
topology: v6e:2x2x1
jax: 0.10.0
libtpu: 0.0.40
codegen_flags: <defaults>
</compile_context>

<pallas_src>
import jax
import jax.numpy as jnp
from jax import lax
from jax.experimental import pallas as pl
from jax.experimental.pallas import tpu as pltpu


def _round_up(x, m):
    return ((x + m - 1) // m) * m


def _aggregation_kernel(x_ref, w_ref, b_ref, o_ref):
    # x_ref: [TILE_M, d_in_p]   (rows x features)
    # w_ref: [TILE_N, d_in_p]   (PyTorch nn.Linear layout: [out, in])
    # b_ref: [1, TILE_N]
    # o_ref: [TILE_M, TILE_N]
    # Contract the last dim of both operands on the MXU (no wrapper transpose).
    acc = lax.dot_general(
        x_ref[...], w_ref[...],
        dimension_numbers=(((1,), (1,)), ((), ())),
        preferred_element_type=jnp.float32,
    )
    acc = acc + b_ref[...]                        # broadcast (1, TILE_N) over rows
    o_ref[...] = jnp.maximum(acc, 0.0).astype(o_ref.dtype)


def aggregation_forward(x, weight, bias, *, vmem_budget_bytes=24 * 1024 * 1024):
    """y = relu(x @ weight.T + bias)

    x:      [N, input_dim]       float32
    weight: [output_dim, input_dim]  (PyTorch nn.Linear layout)
    bias:   [output_dim]
    """
    n, d_in = x.shape
    d_out, d_in_w = weight.shape
    assert d_in_w == d_in

    # --- lane-dense padding of feature dims (multiples of 128 lanes) ---------
    d_in_p = _round_up(d_in, 128)
    d_out_p = _round_up(d_out, 128)

    # --- output-column tile: lane-dense multiple of 128 ---------------------
    tile_n = min(d_out_p, 512)

    # --- row tile: multiple of 8 sublanes, capped by a conservative VMEM ----
    # budget (double-buffered x / w / b / out tiles, f32) so it fits v7x too.
    tile_m = min(512, _round_up(n, 8))

    def _vmem_bytes(tm):
        return 2 * 4 * (tm * d_in_p + tile_n * d_in_p + tile_n + tm * tile_n)

    while tile_m > 8 and _vmem_bytes(tile_m) > vmem_budget_bytes:
        tile_m //= 2
    tile_m = max(8, _round_up(tile_m, 8))

    n_p = _round_up(n, tile_m)

    # --- zero-pad inputs to tiled shapes (no-op when already aligned) -------
    x_p = x
    if (n_p, d_in_p) != (n, d_in):
        x_p = jnp.zeros((n_p, d_in_p), x.dtype).at[:n, :d_in].set(x)
    w_p = weight
    if (d_out_p, d_in_p) != (d_out, d_in):
        w_p = jnp.zeros((d_out_p, d_in_p), weight.dtype).at[:d_out, :d_in].set(weight)
    b_p = bias.reshape(1, d_out)
    if d_out_p != d_out:
        b_p = jnp.zeros((1, d_out_p), bias.dtype).at[:, :d_out].set(b_p)

    grid = (n_p // tile_m, d_out_p // tile_n)

    cost = pl.CostEstimate(
        flops=2 * n_p * d_in_p * d_out_p,
        transcendentals=0,
        bytes_accessed=4 * (n_p * d_in_p + d_out_p * d_in_p + n_p * d_out_p),
    )

    # TODO(synk): add a K grid axis + f32 VMEM accumulator (pl.when init/finalize)
    # for very large input_dim (>~2K) so the full [d_out, d_in] weight need not
    # be resident per tile on v7x's 64 MiB VMEM.
    out_p = pl.pallas_call(
        _aggregation_kernel,
        out_shape=jax.ShapeDtypeStruct((n_p, d_out_p), x.dtype),
        grid_spec=pltpu.PrefetchScalarGridSpec(
            num_scalar_prefetch=0,
            grid=grid,
            in_specs=[
                pl.BlockSpec((tile_m, d_in_p), lambda i, j: (i, 0)),   # x rows
                pl.BlockSpec((tile_n, d_in_p), lambda i, j: (j, 0)),   # weight cols
                pl.BlockSpec((1, tile_n), lambda i, j: (0, j)),        # bias
            ],
            out_specs=pl.BlockSpec((tile_m, tile_n), lambda i, j: (i, j)),
        ),
        compiler_params=pltpu.CompilerParams(
            dimension_semantics=("parallel", "parallel"),
        ),
        cost_estimate=cost,
    )(x_p, w_p, b_p)

    return out_p[:n, :d_out]


if __name__ == "__main__":
    key = jax.random.PRNGKey(0)
    k_x, k_w, k_b = jax.random.split(key, 3)

    N, INPUT_DIM, OUTPUT_DIM = 8, 32, 32

    x = jax.random.normal(k_x, (N, INPUT_DIM), dtype=jnp.float32)
    # Deterministic "Linear" parameters (PyTorch layout: [out, in] weight, [out] bias)
    weight = jax.random.normal(k_w, (OUTPUT_DIM, INPUT_DIM), dtype=jnp.float32) * 0.1
    bias = jax.random.normal(k_b, (OUTPUT_DIM,), dtype=jnp.float32) * 0.1

    y = aggregation_forward(x, weight, bias)
    y = jax.block_until_ready(y)

    # Reference check against plain JAX
    y_ref = jnp.maximum(x @ weight.T + bias, 0.0)
    assert y.shape == (N, OUTPUT_DIM)
    assert jnp.allclose(y, y_ref, atol=1e-5, rtol=1e-5)

    print("KERNEL_OK")
</pallas_src>

<mosaic_0001>
module attributes {stable_mosaic.version = 11 : i64} {
  func.func @_aggregation_kernel(%arg0: i32, %arg1: i32, %arg2: memref<8x128xf32, #tpu.memory_space<vmem>>, %arg3: memref<128x128xf32, #tpu.memory_space<vmem>>, %arg4: memref<1x128xf32, #tpu.memory_space<vmem>>, %arg5: memref<8x128xf32, #tpu.memory_space<vmem>>) attributes {dimension_semantics = [#tpu.dimension_semantics<parallel>, #tpu.dimension_semantics<parallel>], iteration_bounds = array<i64: 1, 1>, scalar_prefetch = 0 : i64, scratch_operands = 0 : i64, tpu.core_type = #tpu.core_type<tc>, window_params = [{transform_indices = @transform_0, window_bounds = array<i64: 8, 128>}, {transform_indices = @transform_1, window_bounds = array<i64: 128, 128>}, {transform_indices = @transform_2, window_bounds = array<i64: 1, 128>}, {transform_indices = @transform_3, window_bounds = array<i64: 8, 128>}]} {
    %c0 = arith.constant 0 : index
    %c0_0 = arith.constant 0 : index
    %0 = vector.load %arg2[%c0, %c0_0] : memref<8x128xf32, #tpu.memory_space<vmem>>, vector<8x128xf32>
    %c0_1 = arith.constant 0 : index
    %c0_2 = arith.constant 0 : index
    %1 = vector.load %arg3[%c0_1, %c0_2] : memref<128x128xf32, #tpu.memory_space<vmem>>, vector<128x128xf32>
    %cst = arith.constant dense<0.000000e+00> : vector<8x128xf32>
    %2 = tpu.matmul %0, %1, %cst {dimension_numbers = #tpu.dot_dimension_numbers<[1], [1], [0], [0], [0, 0, 1, 0], [], []>} : vector<8x128xf32>, vector<128x128xf32>, vector<8x128xf32> -> vector<8x128xf32>
    %c0_3 = arith.constant 0 : index
    %c0_4 = arith.constant 0 : index
    %3 = vector.load %arg4[%c0_3, %c0_4] : memref<1x128xf32, #tpu.memory_space<vmem>>, vector<1x128xf32>
    %4 = vector.broadcast %3 : vector<1x128xf32> to vector<8x128xf32>
    %5 = arith.addf %2, %4 : vector<8x128xf32>
    %cst_5 = arith.constant 0.000000e+00 : f32
    %6 = vector.broadcast %cst_5 : f32 to vector<8x128xf32>
    %7 = arith.maximumf %5, %6 : vector<8x128xf32>
    %c0_6 = arith.constant 0 : index
    %c0_7 = arith.constant 0 : index
    %8 = vector.load %arg5[%c0_6, %c0_7] : memref<8x128xf32, #tpu.memory_space<vmem>>, vector<8x128xf32>
    tpu.vector_store %arg5[%c0_6, %c0_7], %7 {strides = array<i32>} : memref<8x128xf32, #tpu.memory_space<vmem>>, vector<8x128xf32>,
    return
  }
  func.func @transform_0(%arg0: i32, %arg1: i32) -> (i32, i32) {
    %c0_i32 = arith.constant 0 : i32
    %c0_i32_0 = arith.constant 0 : i32
    return %arg0, %c0_i32 : i32, i32
  }
  func.func @transform_1(%arg0: i32, %arg1: i32) -> (i32, i32) {
    %c0_i32 = arith.constant 0 : i32
    %c0_i32_0 = arith.constant 0 : i32
    return %arg1, %c0_i32 : i32, i32
  }
  func.func @transform_2(%arg0: i32, %arg1: i32) -> (i32, i32) {
    %c0_i32 = arith.constant 0 : i32
    %c0_i32_0 = arith.constant 0 : i32
    return %c0_i32, %arg1 : i32, i32
  }
  func.func @transform_3(%arg0: i32, %arg1: i32) -> (i32, i32) {
    %c0_i32 = arith.constant 0 : i32
    return %arg0, %arg1 : i32, i32
  }
}

</mosaic_0001>

<bundles_post_ra>
// kernel: tpu_custom_call.1
= control target key start
LH: loop header
LB: loop body
LE: loop exit
PB: predicated region body
PF: predicated region fallthrough
CT: control target
= control target key end

     0   :  { %8 = vsyncpa [#allocation3], 0  ;;  %s318_s0 = inlined_call_operand.hbm [shape: f32[8,128], index: 0, kind: input, shape index: {}]   ;;  %s319_s1 = inlined_call_operand.hbm [shape: f32[128,128], index: 1, kind: input, shape index: {}]   ;;  %s320_s2 = inlined_call_operand.vmem [shape: f32[1,128], index: 2, kind: input, shape index: {}]   ;;  %s321_s3 = inlined_call_operand.hbm [shape: f32[8,128], index: 3, kind: output, shape index: {}]  }
   0x1   :  { %9 = vsyncpa [#allocation6], 0 }
   0x2   :  { %10 = vsyncpa [#allocation4], 0  ;;  %s279_s12 = smov [#allocation2]   ;;  %s280_s14 = smov [#allocation5]  }
   0x3   :  { %s17_s13 = sshll.u32 %s279_s12, 4  ;;  %s26_s15 = sshll.u32 %s280_s14, 4  ;;  %s18_s13 = int_to_ptr.vmem [resolvable:$true] %s17_s13  ;;  %s27_s15 = int_to_ptr.vmem [resolvable:$true] %s26_s15 }
   0x4   :  { %s221_s16 = scalar_lea.vmem %s18_s13, 128  ;;  %p226_p1 = scmp.lt.s32.totalorder %s18_s13, %s18_s13 }
   0x5   :  { %p222_p0 = scmp.ne.s32.totalorder %s18_s13, %s221_s16  ;;  %p227_p2 = scmp.lt.s32.totalorder %s221_s16, %s221_s16 }
   0x7   :  { %p228_p3 = por %p227_p2, %p226_p1 }
   0x9   :  { %p229_p4 = pnand %p228_p3, %p222_p0 }
   0xb   :  { %232 = shalt.err (!%p229_p4)
}
   0xc   :  { %20 = dma.hbm_to_vmem [thread:$0]  %s318_s0, 128, %s18_s13, [#allocation3]  }
   0xd   :  { %s241_s19 = scalar_lea.vmem %s27_s15, 2048  ;;  %p246_p6 = scmp.lt.s32.totalorder %s27_s15, %s27_s15 }
   0xe   :  { %p242_p5 = scmp.ne.s32.totalorder %s27_s15, %s241_s19  ;;  %p247_p7 = scmp.lt.s32.totalorder %s241_s19, %s241_s19 }
  0x10   :  { %p248_p8 = por %p247_p7, %p246_p6 }
  0x12   :  { %p249_p9 = pnand %p248_p8, %p242_p5 }
  0x14   :  { %252 = shalt.err (!%p249_p9)
}
  0x15   :  { %s281_s20 = smov 128   ;;  %s282_s21 = smov 8  }
  0x16   :  { %32 = dma.hbm_to_vmem [thread:$0]  %s319_s1, 2048, %s27_s15, [#allocation6], %s281_s20, %s281_s20, %s282_s21  }
  0x17   :  { %273 = dma.done.wait [#allocation3], 128  }
  0x18   :  { %274 = vsyncadd [#allocation3], 4294967168 }
  0x19   :  { %275 = dma.done.wait [#allocation6], 2048  }
  0x1a   :  { %276 = vsyncadd [#allocation6], 4294965248  ;;  %v283_v0 = vmov 0.0   ;;  %vm284_vm0 = vmmov 0   ;;  %v57_v1 = vld [vmem:[#allocation5 + $0x78] sm:$0xff]  ;;  %v56_v2 = vld [vmem:[#allocation5 + $0x70] sm:$0xff] }
  0x1b   :  { %171 = vmatprep.subr.mxu0 %v283_v0  ;;  %203 = vmatprep.mubr.msk.f32.mxu0 %vm284_vm0, %v283_v0  ;;  %v55_v3 = vld [vmem:[#allocation5 + $0x68] sm:$0xff]  ;;  %v54_v4 = vld [vmem:[#allocation5 + $0x60] sm:$0xff]  ;;  %v53_v5 = vld [vmem:[#allocation5 + $0x58] sm:$0xff]  ;;  %s285_s24 = smov [#allocation7]  }
  0x1c   :  { %172 = vmatpush3.xpose.msra.mxu0 %v57_v1  ;;  %v52_v6 = vld [vmem:[#allocation5 + $0x50] sm:$0xff]  ;;  %v51_v7 = vld [vmem:[#allocation5 + $0x48] sm:$0xff]  ;;  %v50_v8 = vld [vmem:[#allocation5 + $0x40] sm:$0xff]  ;;  %s143_s25 = sshll.u32 %s285_s24, 4  ;;  %s144_s25 = int_to_ptr.vmem [resolvable:$true] %s143_s25 }
  0x1d   :  { %173 = vmatprep.subr.mxu0 %v283_v0  ;;  %v49_v9 = vld [vmem:[#allocation5 + $0x38] sm:$0xff]  ;;  %v48_v10 = vld [vmem:[#allocation5 + $0x30] sm:$0xff]  ;;  %v47_v11 = vld [vmem:[#allocation5 + $0x28] sm:$0xff]  ;;  %s253_s26 = scalar_lea.vmem %s144_s25, 128  ;;  %p258_p11 = scmp.lt.s32.totalorder %s144_s25, %s144_s25 }
  0x1e   :  { %v46_v12 = vld [vmem:[#allocation5 + $0x20] sm:$0xff]  ;;  %v45_v13 = vld [vmem:[#allocation5 + $0x18] sm:$0xff]  ;;  %v44_v14 = vld [vmem:[#allocation5 + $0x10] sm:$0xff]  ;;  %p254_p10 = scmp.ne.s32.totalorder %s144_s25, %s253_s26  ;;  %p259_p12 = scmp.lt.s32.totalorder %s253_s26, %s253_s26 }
  0x1f   :  { %v43_v15 = vld [vmem:[#allocation5 + $0x8] sm:$0xff]  ;;  %v42_v16 = vld [vmem:[#allocation5] sm:$0xff]  ;;  %v41_v17 = vld [vmem:[#allocation2] sm:$0xff] }
  0x20   :  { %174 = vmatpush3.xpose.msra.mxu0 %v56_v2  ;;  %v153_v18 = vld [vmem:[%s320_s2] ss:$0 sm:$0xff]  ;;  %p260_p13 = por %p259_p12, %p258_p11 }
  0x21   :  { %175 = vmatprep.subr.mxu0 %v283_v0 }
  0x22   :  { %p261_p0 = pnand %p260_p13, %p254_p10 }
  0x24   :  { %176 = vmatpush3.xpose.msra.mxu0 %v55_v3 }
  0x25   :  { %177 = vmatprep.subr.mxu0 %v283_v0 }
  0x28   :  { %178 = vmatpush3.xpose.msra.mxu0 %v54_v4 }
  0x29   :  { %179 = vmatprep.subr.mxu0 %v283_v0 }
  0x2c   :  { %180 = vmatpush3.xpose.msra.mxu0 %v53_v5 }
  0x2d   :  { %181 = vmatprep.subr.mxu0 %v283_v0 }
  0x30   :  { %182 = vmatpush3.xpose.msra.mxu0 %v52_v6 }
  0x31   :  { %183 = vmatprep.subr.mxu0 %v283_v0 }
  0x34   :  { %184 = vmatpush3.xpose.msra.mxu0 %v51_v7 }
  0x35   :  { %185 = vmatprep.subr.mxu0 %v283_v0 }
  0x38   :  { %186 = vmatpush3.xpose.msra.mxu0 %v50_v8 }
  0x39   :  { %187 = vmatprep.subr.mxu0 %v283_v0 }
  0x3c   :  { %188 = vmatpush3.xpose.msra.mxu0 %v49_v9 }
  0x3d   :  { %189 = vmatprep.subr.mxu0 %v283_v0 }
  0x40   :  { %190 = vmatpush3.xpose.msra.mxu0 %v48_v10 }
  0x41   :  { %191 = vmatprep.subr.mxu0 %v283_v0 }
  0x44   :  { %192 = vmatpush3.xpose.msra.mxu0 %v47_v11 }
  0x45   :  { %193 = vmatprep.subr.mxu0 %v283_v0 }
  0x48   :  { %194 = vmatpush3.xpose.msra.mxu0 %v46_v12 }
  0x49   :  { %195 = vmatprep.subr.mxu0 %v283_v0 }
  0x4c   :  { %196 = vmatpush3.xpose.msra.mxu0 %v45_v13 }
  0x4d   :  { %197 = vmatprep.subr.mxu0 %v283_v0 }
  0x50   :  { %198 = vmatpush3.xpose.msra.mxu0 %v44_v14 }
  0x51   :  { %199 = vmatprep.subr.mxu0 %v283_v0 }
  0x54   :  { %200 = vmatpush3.xpose.msra.mxu0 %v43_v15 }
  0x55   :  { %201 = vmatprep.subr.mxu0 %v283_v0 }
  0x58   :  { %202 = vmatpush3.xpose.msra.mxu0 %v42_v16 }
  0x5b   :  { %204 = vmatmul.mubr.f32.vlgmr.msra.gmra.mxu0 %v41_v17 }
 0x11b   :  { %v131_v19 = vpop.f32.mrf.mxu0 }
 0x11c   :  { %v132_v20 = vadd.f32 %v153_v18, %v131_v19 }
 0x11d   :  { %v205_v21 = vpop.f32.mrf.mxu0 }
 0x11e   :  { %v135_v22 = vmax.f32 %v132_v20, 0.0 }
 0x120   :  { %136 = vst [vmem:[#allocation7] sm:$0xff] %v135_v22 }
 0x121   :  { %264 = shalt.err (!%p261_p0)
}
 0x122   :  { %146 = dma.vmem_to_hbm [thread:$0]  %s144_s25, 128, %s321_s3, [#allocation4]  }
 0x123   :  { %277 = dma.done.wait [#allocation4], 128  }
 0x124   :  { %278 = vsyncadd [#allocation4], 4294967168 }
 0x125   :  { %150 = vsyncpa [#allocation3], 1 }
 0x126   :  { %151 = vsyncpa [#allocation6], 1 }
 0x127   :  { %152 = vsyncpa [#allocation4], 1 }

</bundles_post_ra>
